<compile_context>
chip_gen: v7x
topology: tpu7x:2x2x1
jax: 0.10.0
libtpu: 0.0.40
codegen_flags: <defaults>
</compile_context>

<pallas_src>
import functools

import jax
import jax.numpy as jnp
from jax.experimental import pallas as pl
from jax.experimental.pallas import tpu as pltpu

H1 = 128     # fc1 output width (already lane-dense)
H2P = 128    # fc2 output width, zero-padded 64 -> 128
OUTP = 128   # fc3 output width, zero-padded output_dim -> 128
BM = 256     # batch block


def mlp_kernel(x_ref, w1_ref, b1_ref, w2_ref, b2_ref, w3_ref, b3_ref, o_ref):
    # fc1 + relu : (BM, Din)bf16 @ (Din, 128)bf16 -> f32
    h1 = jnp.dot(x_ref[...], w1_ref[...],
                 preferred_element_type=jnp.float32) + b1_ref[...]
    h1 = jnp.maximum(h1, 0.0)
    # fc2 + relu : (BM, 128) @ (128, 128)   (cols 64:128 are zero-padded)
    h2 = jnp.dot(h1.astype(jnp.bfloat16), w2_ref[...],
                 preferred_element_type=jnp.float32) + b2_ref[...]
    h2 = jnp.maximum(h2, 0.0)
    # fc3 : (BM, 128) @ (128, 128)   (padded rows/cols), lane-dense store
    o_ref[...] = (jnp.dot(h2.astype(jnp.bfloat16), w3_ref[...],
                          preferred_element_type=jnp.float32) + b3_ref[...])


def pad_params(params):
    """f32 (in,out)/(1,out) params -> lane-padded bf16 weights + f32 biases."""
    w1, b1, w2, b2, w3, b3 = params
    out_dim = w3.shape[1]
    w2p = jnp.zeros((H1, H2P), jnp.float32).at[:, : w2.shape[1]].set(w2)
    b2p = jnp.zeros((1, H2P), jnp.float32).at[:, : b2.shape[1]].set(b2)
    w3p = jnp.zeros((H2P, OUTP), jnp.float32).at[: w3.shape[0], :out_dim].set(w3)
    b3p = jnp.zeros((1, OUTP), jnp.float32).at[:, :out_dim].set(b3)
    return (w1.astype(jnp.bfloat16), b1.astype(jnp.float32),
            w2p.astype(jnp.bfloat16), b2p,
            w3p.astype(jnp.bfloat16), b3p)


@functools.partial(jax.jit, static_argnames=("output_dim",))
def custom_net_forward(x, padded_params, output_dim):
    w1, b1, w2, b2, w3, b3 = padded_params
    B, din = x.shape
    b_pad = pl.cdiv(B, BM) * BM
    xb = jnp.zeros((b_pad, din), jnp.bfloat16).at[:B].set(x.astype(jnp.bfloat16))

    flops = 2 * b_pad * (din * H1 + H1 * H2P + H2P * OUTP)
    bytes_accessed = (xb.size * 2                           # x (bf16)
                      + (w1.size + w2.size + w3.size) * 2   # weights (bf16)
                      + (b1.size + b2.size + b3.size) * 4   # biases (f32)
                      + b_pad * OUTP * 4)                   # output (f32)

    out = pl.pallas_call(
        mlp_kernel,
        out_shape=jax.ShapeDtypeStruct((b_pad, OUTP), jnp.float32),
        grid=(b_pad // BM,),
        in_specs=[
            pl.BlockSpec((BM, din), lambda i: (i, 0)),     # x: blocked over batch
            pl.BlockSpec((din, H1), lambda i: (0, 0)),     # weights/biases: resident
            pl.BlockSpec((1, H1), lambda i: (0, 0)),
            pl.BlockSpec((H1, H2P), lambda i: (0, 0)),
            pl.BlockSpec((1, H2P), lambda i: (0, 0)),
            pl.BlockSpec((H2P, OUTP), lambda i: (0, 0)),
            pl.BlockSpec((1, OUTP), lambda i: (0, 0)),
        ],
        out_specs=pl.BlockSpec((BM, OUTP), lambda i: (i, 0)),
        compiler_params=pltpu.CompilerParams(
            dimension_semantics=("parallel",)),
        cost_estimate=pl.CostEstimate(flops=flops, transcendentals=0,
                                      bytes_accessed=bytes_accessed),
    )(xb, w1, b1, w2, b2, w3, b3)
    return out[:B, :output_dim]


def init_params(key, input_dim, output_dim):
    """Deterministic init mimicking nn.Linear's U(-1/sqrt(fan_in), 1/sqrt(fan_in))."""
    dims = [(input_dim, 128), (128, 64), (64, output_dim)]
    params = []
    for fan_in, fan_out in dims:
        kw, kb, key = jax.random.split(key, 3)
        bound = 1.0 / jnp.sqrt(float(fan_in))
        w = jax.random.uniform(kw, (fan_in, fan_out), jnp.float32, -bound, bound)
        b = jax.random.uniform(kb, (1, fan_out), jnp.float32, -bound, bound)
        params += [w, b]
    return params


def reference_forward_f32(x, params):
    w1, b1, w2, b2, w3, b3 = params
    h1 = jnp.maximum(x @ w1 + b1, 0.0)
    h2 = jnp.maximum(h1 @ w2 + b2, 0.0)
    return h2 @ w3 + b3


def reference_forward_bf16(x, params):
    """Emulates the kernel's bf16-operand / f32-accumulate arithmetic."""
    w1, b1, w2, b2, w3, b3 = params
    h1 = jnp.dot(x.astype(jnp.bfloat16), w1.astype(jnp.bfloat16),
                 preferred_element_type=jnp.float32) + b1
    h1 = jnp.maximum(h1, 0.0)
    h2 = jnp.dot(h1.astype(jnp.bfloat16), w2.astype(jnp.bfloat16),
                 preferred_element_type=jnp.float32) + b2
    h2 = jnp.maximum(h2, 0.0)
    return jnp.dot(h2.astype(jnp.bfloat16), w3.astype(jnp.bfloat16),
                   preferred_element_type=jnp.float32) + b3


if __name__ == "__main__":
    key = jax.random.PRNGKey(0)
    kx, kp = jax.random.split(key)

    B, input_dim, output_dim = 300, 32, 10   # exercises batch padding + 2 grid steps
    x = jax.random.normal(kx, (B, input_dim), jnp.float32)
    params = init_params(kp, input_dim, output_dim)
    padded = pad_params(params)

    out = custom_net_forward(x, padded, output_dim)
    out = jax.block_until_ready(out)
    assert out.shape == (B, output_dim)

    # Tight check vs a bf16-emulating reference, loose check vs pure-f32 math.
    ref_bf16 = reference_forward_bf16(x, params)
    ref_f32 = reference_forward_f32(x, params)
    assert jnp.allclose(out, ref_bf16, atol=5e-3, rtol=5e-3), (
        float(jnp.max(jnp.abs(out - ref_bf16))))
    assert jnp.allclose(out, ref_f32, atol=1e-1, rtol=1e-1), (
        float(jnp.max(jnp.abs(out - ref_f32))))

    print("KERNEL_OK")
</pallas_src>

<mosaic_0001>
module attributes {stable_mosaic.version = 11 : i64} {
  func.func @mlp_kernel(%arg0: i32, %arg1: memref<256x32xbf16, #tpu.memory_space<vmem>>, %arg2: memref<32x128xbf16, #tpu.memory_space<vmem>>, %arg3: memref<1x128xf32, #tpu.memory_space<vmem>>, %arg4: memref<128x128xbf16, #tpu.memory_space<vmem>>, %arg5: memref<1x128xf32, #tpu.memory_space<vmem>>, %arg6: memref<128x128xbf16, #tpu.memory_space<vmem>>, %arg7: memref<1x128xf32, #tpu.memory_space<vmem>>, %arg8: memref<256x128xf32, #tpu.memory_space<vmem>>) attributes {dimension_semantics = [#tpu.dimension_semantics<parallel>], iteration_bounds = array<i64: 2>, scalar_prefetch = 0 : i64, scratch_operands = 0 : i64, tpu.core_type = #tpu.core_type<tc>, window_params = [{transform_indices = @transform_0, window_bounds = array<i64: 256, 32>}, {pipeline_mode = #tpu.pipeline_mode<synchronous>, transform_indices = @transform_1, window_bounds = array<i64: 32, 128>}, {pipeline_mode = #tpu.pipeline_mode<synchronous>, transform_indices = @transform_2, window_bounds = array<i64: 1, 128>}, {pipeline_mode = #tpu.pipeline_mode<synchronous>, transform_indices = @transform_3, window_bounds = array<i64: 128, 128>}, {pipeline_mode = #tpu.pipeline_mode<synchronous>, transform_indices = @transform_4, window_bounds = array<i64: 1, 128>}, {pipeline_mode = #tpu.pipeline_mode<synchronous>, transform_indices = @transform_5, window_bounds = array<i64: 128, 128>}, {pipeline_mode = #tpu.pipeline_mode<synchronous>, transform_indices = @transform_6, window_bounds = array<i64: 1, 128>}, {transform_indices = @transform_7, window_bounds = array<i64: 256, 128>}]} {
    %c0 = arith.constant 0 : index
    %c0_0 = arith.constant 0 : index
    %0 = vector.load %arg1[%c0, %c0_0] : memref<256x32xbf16, #tpu.memory_space<vmem>>, vector<256x32xbf16>
    %c0_1 = arith.constant 0 : index
    %c0_2 = arith.constant 0 : index
    %1 = vector.load %arg2[%c0_1, %c0_2] : memref<32x128xbf16, #tpu.memory_space<vmem>>, vector<32x128xbf16>
    %cst = arith.constant dense<0.000000e+00> : vector<256x128xf32>
    %2 = tpu.matmul %0, %1, %cst {dimension_numbers = #tpu.dot_dimension_numbers<[1], [0], [0], [1], [0, 0, 1, 1], [], []>} : vector<256x32xbf16>, vector<32x128xbf16>, vector<256x128xf32> -> vector<256x128xf32>
    %c0_3 = arith.constant 0 : index
    %c0_4 = arith.constant 0 : index
    %3 = vector.load %arg3[%c0_3, %c0_4] : memref<1x128xf32, #tpu.memory_space<vmem>>, vector<1x128xf32>
    %4 = vector.broadcast %3 : vector<1x128xf32> to vector<256x128xf32>
    %5 = arith.addf %2, %4 : vector<256x128xf32>
    %cst_5 = arith.constant 0.000000e+00 : f32
    %6 = vector.broadcast %cst_5 : f32 to vector<256x128xf32>
    %7 = arith.maximumf %5, %6 : vector<256x128xf32>
    %8 = arith.truncf %7 : vector<256x128xf32> to vector<256x128xbf16>
    %c0_6 = arith.constant 0 : index
    %c0_7 = arith.constant 0 : index
    %9 = vector.load %arg4[%c0_6, %c0_7] : memref<128x128xbf16, #tpu.memory_space<vmem>>, vector<128x128xbf16>
    %cst_8 = arith.constant dense<0.000000e+00> : vector<256x128xf32>
    %10 = tpu.matmul %8, %9, %cst_8 {dimension_numbers = #tpu.dot_dimension_numbers<[1], [0], [0], [1], [0, 0, 1, 1], [], []>} : vector<256x128xbf16>, vector<128x128xbf16>, vector<256x128xf32> -> vector<256x128xf32>
    %c0_9 = arith.constant 0 : index
    %c0_10 = arith.constant 0 : index
    %11 = vector.load %arg5[%c0_9, %c0_10] : memref<1x128xf32, #tpu.memory_space<vmem>>, vector<1x128xf32>
    %12 = vector.broadcast %11 : vector<1x128xf32> to vector<256x128xf32>
    %13 = arith.addf %10, %12 : vector<256x128xf32>
    %cst_11 = arith.constant 0.000000e+00 : f32
    %14 = vector.broadcast %cst_11 : f32 to vector<256x128xf32>
    %15 = arith.maximumf %13, %14 : vector<256x128xf32>
    %16 = arith.truncf %15 : vector<256x128xf32> to vector<256x128xbf16>
    %c0_12 = arith.constant 0 : index
    %c0_13 = arith.constant 0 : index
    %17 = vector.load %arg6[%c0_12, %c0_13] : memref<128x128xbf16, #tpu.memory_space<vmem>>, vector<128x128xbf16>
    %cst_14 = arith.constant dense<0.000000e+00> : vector<256x128xf32>
    %18 = tpu.matmul %16, %17, %cst_14 {dimension_numbers = #tpu.dot_dimension_numbers<[1], [0], [0], [1], [0, 0, 1, 1], [], []>} : vector<256x128xbf16>, vector<128x128xbf16>, vector<256x128xf32> -> vector<256x128xf32>
    %c0_15 = arith.constant 0 : index
    %c0_16 = arith.constant 0 : index
    %19 = vector.load %arg7[%c0_15, %c0_16] : memref<1x128xf32, #tpu.memory_space<vmem>>, vector<1x128xf32>
    %20 = vector.broadcast %19 : vector<1x128xf32> to vector<256x128xf32>
    %21 = arith.addf %18, %20 : vector<256x128xf32>
    %c0_17 = arith.constant 0 : index
    %c0_18 = arith.constant 0 : index
    %22 = vector.load %arg8[%c0_17, %c0_18] : memref<256x128xf32, #tpu.memory_space<vmem>>, vector<256x128xf32>
    tpu.vector_store %arg8[%c0_17, %c0_18], %21 {strides = array<i32>} : memref<256x128xf32, #tpu.memory_space<vmem>>, vector<256x128xf32>,
    return
  }
  func.func @transform_0(%arg0: i32) -> (i32, i32) {
    %c0_i32 = arith.constant 0 : i32
    %c0_i32_0 = arith.constant 0 : i32
    return %arg0, %c0_i32 : i32, i32
  }
  func.func @transform_1(%arg0: i32) -> (i32, i32) {
    %c0_i32 = arith.constant 0 : i32
    %c0_i32_0 = arith.constant 0 : i32
    %c0_i32_1 = arith.constant 0 : i32
    return %c0_i32, %c0_i32_0 : i32, i32
  }
  func.func @transform_2(%arg0: i32) -> (i32, i32) {
    %c0_i32 = arith.constant 0 : i32
    %c0_i32_0 = arith.constant 0 : i32
    %c0_i32_1 = arith.constant 0 : i32
    return %c0_i32, %c0_i32_0 : i32, i32
  }
  func.func @transform_3(%arg0: i32) -> (i32, i32) {
    %c0_i32 = arith.constant 0 : i32
    %c0_i32_0 = arith.constant 0 : i32
    %c0_i32_1 = arith.constant 0 : i32
    return %c0_i32, %c0_i32_0 : i32, i32
  }
  func.func @transform_4(%arg0: i32) -> (i32, i32) {
    %c0_i32 = arith.constant 0 : i32
    %c0_i32_0 = arith.constant 0 : i32
    %c0_i32_1 = arith.constant 0 : i32
    return %c0_i32, %c0_i32_0 : i32, i32
  }
  func.func @transform_5(%arg0: i32) -> (i32, i32) {
    %c0_i32 = arith.constant 0 : i32
    %c0_i32_0 = arith.constant 0 : i32
    %c0_i32_1 = arith.constant 0 : i32
    return %c0_i32, %c0_i32_0 : i32, i32
  }
  func.func @transform_6(%arg0: i32) -> (i32, i32) {
    %c0_i32 = arith.constant 0 : i32
    %c0_i32_0 = arith.constant 0 : i32
    %c0_i32_1 = arith.constant 0 : i32
    return %c0_i32, %c0_i32_0 : i32, i32
  }
  func.func @transform_7(%arg0: i32) -> (i32, i32) {
    %c0_i32 = arith.constant 0 : i32
    %c0_i32_0 = arith.constant 0 : i32
    return %arg0, %c0_i32 : i32, i32
  }
}

</mosaic_0001>

<bundles_post_ra>
// kernel: custom_net_forward.1
= control target key start
LH: loop header
LB: loop body
LE: loop exit
PB: predicated region body
PF: predicated region fallthrough
CT: control target
= control target key end

     0   :  { %s1632_s24 = smov 0   ;;  %s1892_s0 = inlined_call_operand.vmem [shape: bf16[512,32], index: 0, kind: input, shape index: {}]   ;;  %s1893_s1 = inlined_call_operand.vmem [shape: bf16[32,128], index: 1, kind: input, shape index: {}]   ;;  %s1894_s2 = inlined_call_operand.vmem [shape: f32[1,128], index: 2, kind: input, shape index: {}]   ;;  %s1895_s3 = inlined_call_operand.vmem [shape: bf16[128,128], index: 3, kind: input, shape index: {}]   ;;  %s1896_s4 = inlined_call_operand.vmem [shape: f32[1,128], index: 4, kind: input, shape index: {}]   ;;  %s1897_s5 = inlined_call_operand.vmem [shape: bf16[128,128], index: 5, kind: input, shape index: {}]   ;;  %s1898_s6 = inlined_call_operand.vmem [shape: f32[1,128], index: 6, kind: input, shape index: {}]   ;;  %s1899_s7 = inlined_call_operand.vmem [shape: f32[512,128], index: 7, kind: output, shape index: {}]  }
   0x1 LB: > { %s1276_s25 = sadd.s32 4294967295, %s1590_s24   ;;  %p1280_p0 = scmp.ge.s32.totalorder %s1590_s24, 1  ;;  %s1590_s24 = sphi %s1632_s24, %s17_s24  }
   0x2   : > { %p238_p1 = scmp.lt.s32.totalorder %s1590_s24, 3 }
   0x4   : > { %p239_p2 = pnand %p1280_p0, %p238_p1 }
   0x5   : > { %v1550_v0 = vld [vmem:[%s1893_s1] sm:$0xff] (!%p239_p2)   ;;  %s1281_s28 = sshll.u32 (!%p239_p2), %s1276_s25, 5  ;;  %v1551_v1 = vld [vmem:[%s1893_s1 + $0x8] sm:$0xff] (!%p239_p2)   ;;  %vm418_vm0 = vcmask (!%p239_p2), 261120   ;;  %v1570_v12 = vld [vmem:[%s1895_s3 + $0x10] sm:$0xff] (!%p239_p2)  }
   0x6   : > { %242 = sbr.rel (%p239_p2) target bundleno = 736 (0x2e0), region = 48  ;;  %p271_p3 = scmp.lt.s32.totalorder (!%p239_p2), %s1281_s28, 63  ;;  %1406 = vmatprep.subr.bf16.mxu0 (!%p239_p2), %v1550_v0  ;;  %1538 = vmatprep.subr.bf16.mxu1 (!%p239_p2), %v1550_v0  ;;  %v1568_v2 = vld [vmem:[%s1895_s3] sm:$0xff] (!%p239_p2)   ;;  %v1569_v9 = vld [vmem:[%s1895_s3 + $0x8] sm:$0xff] (!%p239_p2)   ;;  %v1571_v17 = vld [vmem:[%s1895_s3 + $0x18] sm:$0xff] (!%p239_p2)  }
   0x7   : > { %1407 = vmatpush3.bf16.msra.mxu0 (!%p239_p2), %v1550_v0  ;;  %1540 = vmatpush3.bf16.msra.mxu1 (!%p239_p2), %v1550_v0  ;;  %v1572_v18 = vld [vmem:[%s1895_s3 + $0x20] sm:$0xff] (!%p239_p2)   ;;  %v1573_v22 = vld [vmem:[%s1895_s3 + $0x28] sm:$0xff] (!%p239_p2)   ;;  %v1574_v24 = vld [vmem:[%s1895_s3 + $0x30] sm:$0xff] (!%p239_p2)  }
   0x8   : > { %1408 = vmatprep.subr.bf16.mxu0 (!%p239_p2), %v1551_v1  ;;  %1539 = vmatprep.subr.bf16.mxu1 (!%p239_p2), %v1551_v1  ;;  %v1575_v25 = vld [vmem:[%s1895_s3 + $0x38] sm:$0xff] (!%p239_p2)   ;;  %v1576_v26 = vld [vmem:[%s1897_s5] sm:$0xff] (!%p239_p2)   ;;  %v1577_v27 = vld [vmem:[%s1897_s5 + $0x8] sm:$0xff] (!%p239_p2)  }
   0x9   : > { %v1578_v28 = vld [vmem:[%s1897_s5 + $0x10] sm:$0xff] (!%p239_p2)   ;;  %v1579_v29 = vld [vmem:[%s1897_s5 + $0x18] sm:$0xff] (!%p239_p2)   ;;  %v1580_v30 = vld [vmem:[%s1897_s5 + $0x20] sm:$0xff] (!%p239_p2)  }
   0xa   : > { %v1581_v31 = vld [vmem:[%s1897_s5 + $0x28] sm:$0xff] (!%p239_p2)   ;;  %v1731_v32 = vld [vmem:[%s1894_s2] ss:$0 sm:$0xff] (!%p239_p2) }
   0xb   : > { %1409 = vmatpush3.bf16.msra.mxu0 (!%p239_p2), %v1551_v1  ;;  %1541 = vmatpush3.bf16.msra.mxu1 (!%p239_p2), %v1551_v1 }
   0xc   : > { %1442 = vmatprep.subr.bf16.mxu1 (!%p239_p2), %v1568_v2  ;;  %1490 = vmatprep.subr.bf16.mxu0 (!%p239_p2), %v1576_v26 }
   0xd   : > { %s1901_s28 = smov (!%p271_p3, %s1281_s28), 63 }
   0xe   : > { %s1282_s10 = sshll.u32 %s1901_s28, 2  ;;  %s1284_s29 = sshll.u32 %s1901_s28, 3 }
   0xf   : > { %s1655_s13 = scalar_lea.vmem %s1892_s0, %s1282_s10  ;;  %s1823_s11 = scalar_lea.vmem %s1899_s7, %s1284_s29 }
  0x10   : > { %v1552_v3 = vld [vmem:[%s1655_s13] sm:$0xff]   ;;  %v1553_v4 = vld [vmem:[%s1655_s13 + $0x8] sm:$0xff]   ;;  %v1554_v5 = vld [vmem:[%s1655_s13 + $0x10] sm:$0xff]  }
  0x11   : > { %1410 = vmatprep.mubr.msk.bf16.mxu0 %vm418_vm0, %v1552_v3  ;;  %v1555_v6 = vld [vmem:[%s1655_s13 + $0x18] sm:$0xff]   ;;  %v1556_v7 = vld [vmem:[%s1655_s13 + $0x20] sm:$0xff]   ;;  %v1561_v10 = vld [vmem:[%s1655_s13 + $0x48] sm:$0xff]  }
  0x12   : > { %1411 = vmatmul.mubr.msk.bf16.vlgmr.msra.gmra.mrb[0].mxu0 %vm418_vm0, %v1553_v4  ;;  %v1560_v8 = vld [vmem:[%s1655_s13 + $0x40] sm:$0xff]   ;;  %v1562_v11 = vld [vmem:[%s1655_s13 + $0x50] sm:$0xff]   ;;  %v1557_v13 = vld [vmem:[%s1655_s13 + $0x28] sm:$0xff]  }
  0x13   : > { %1414 = vmatprep.mubr.msk.bf16.mxu0 %vm418_vm0, %v1554_v5  ;;  %1426 = vmatprep.mubr.msk.bf16.mxu1 %vm418_vm0, %v1560_v8  ;;  %v1558_v14 = vld [vmem:[%s1655_s13 + $0x30] sm:$0xff]   ;;  %v1563_v15 = vld [vmem:[%s1655_s13 + $0x58] sm:$0xff]   ;;  %v1564_v16 = vld [vmem:[%s1655_s13 + $0x60] sm:$0xff]  }
  0x14   : > { %1427 = vmatmul.mubr.msk.bf16.vlgmr.msra.gmra.mrb[0].mxu1 %vm418_vm0, %v1561_v10  ;;  %v1559_v19 = vld [vmem:[%s1655_s13 + $0x38] sm:$0xff]   ;;  %v1565_v20 = vld [vmem:[%s1655_s13 + $0x68] sm:$0xff]   ;;  %v1566_v21 = vld [vmem:[%s1655_s13 + $0x70] sm:$0xff]   ;;  %1491 = vmatpush3.bf16.msra.mxu0 %v1576_v26 }
  0x15   : > { %1430 = vmatprep.mubr.msk.bf16.mxu1 %vm418_vm0, %v1562_v11  ;;  %1443 = vmatpush3.bf16.msra.mxu1 %v1568_v2  ;;  %v1567_v23 = vld [vmem:[%s1655_s13 + $0x78] sm:$0xff]  }
  0x16   : > { %1444 = vmatprep.subr.bf16.mxu1 %v1569_v9  ;;  %1492 = vmatprep.subr.bf16.mxu0 %v1577_v27 }
  0x18   : > { %1493 = vmatpush3.bf16.msra.mxu0 %v1577_v27 }
  0x19   : > { %1445 = vmatpush3.bf16.msra.mxu1 %v1569_v9  ;;  %1494 = vmatprep.subr.bf16.mxu0 %v1578_v28 }
  0x1a   : > { %1415 = vmatmul.mubr.msk.bf16.gmra.mrb[4].mxu0 %vm418_vm0, %v1555_v6  ;;  %1446 = vmatprep.subr.bf16.mxu1 %v1570_v12 }
  0x1b   : > { %1418 = vmatprep.mubr.msk.bf16.mxu0 %vm418_vm0, %v1556_v7 }
  0x1c   : > { %1431 = vmatmul.mubr.msk.bf16.gmra.mrb[4].mxu1 %vm418_vm0, %v1563_v15  ;;  %1495 = vmatpush3.bf16.msra.mxu0 %v1578_v28 }
  0x1d   : > { %1434 = vmatprep.mubr.msk.bf16.mxu1 %vm418_vm0, %v1564_v16  ;;  %1447 = vmatpush3.bf16.msra.mxu1 %v1570_v12 }
  0x1e   : > { %1448 = vmatprep.subr.bf16.mxu1 %v1571_v17  ;;  %1496 = vmatprep.subr.bf16.mxu0 %v1579_v29 }
  0x20   : > { %1497 = vmatpush3.bf16.msra.mxu0 %v1579_v29 }
  0x21   : > { %1449 = vmatpush3.bf16.msra.mxu1 %v1571_v17  ;;  %1498 = vmatprep.subr.bf16.mxu0 %v1580_v30 }
  0x22   : > { %1419 = vmatmul.mubr.msk.bf16.gmra.mrb[8].mxu0 %vm418_vm0, %v1557_v13  ;;  %1450 = vmatprep.subr.bf16.mxu1 %v1572_v18 }
  0x23   : > { %1422 = vmatprep.mubr.msk.bf16.mxu0 %vm418_vm0, %v1558_v14 }
  0x24   : > { %1435 = vmatmul.mubr.msk.bf16.gmra.mrb[8].mxu1 %vm418_vm0, %v1565_v20  ;;  %1499 = vmatpush3.bf16.msra.mxu0 %v1580_v30 }
  0x25   : > { %1438 = vmatprep.mubr.msk.bf16.mxu1 %vm418_vm0, %v1566_v21  ;;  %1451 = vmatpush3.bf16.msra.mxu1 %v1572_v18 }
  0x26   : > { %1452 = vmatprep.subr.bf16.mxu1 %v1573_v22  ;;  %1500 = vmatprep.subr.bf16.mxu0 %v1581_v31 }
  0x28   : > { %1501 = vmatpush3.bf16.msra.mxu0 %v1581_v31 }
  0x29   : > { %1453 = vmatpush3.bf16.msra.mxu1 %v1573_v22 }
  0x2a   : > { %1423 = vmatmul.mubr.msk.bf16.gmra.mrb[12].mxu0 %vm418_vm0, %v1559_v19  ;;  %1454 = vmatprep.subr.bf16.mxu1 %v1574_v24 }
  0x2c   : > { %1439 = vmatmul.mubr.msk.bf16.gmra.mrb[12].mxu1 %vm418_vm0, %v1567_v23 }
  0x2d   : > { %1455 = vmatpush3.bf16.msra.mxu1 %v1574_v24 }
  0x2e   : > { %1456 = vmatprep.subr.bf16.mxu1 %v1575_v25 }
  0x31   : > { %1457 = vmatpush3.bf16.msra.mxu1 %v1575_v25 }
  0xe5   : > { %v1412_v33 = vpop.f32.mrb[0].mxu0 }
  0xe6   : > { %v510_v34 = vadd.f32 %v1412_v33, %v1731_v32  ;;  %v501_v35 = vpop.f32.mrb[1].mxu0 }
  0xe7   : > { %v502_v36 = vadd.f32 %v1731_v32, %v501_v35  ;;  %v1413_v37 = vpop.f32.mrb[2].mxu0  ;;  %v1428_v48 = vpop.f32.mrb[0].mxu1 }
  0xe8   : > { %v513_v38 = vadd.f32 %v1413_v37, %v1731_v32  ;;  %v504_v39 = vpop.f32.mrb[3].mxu0  ;;  %v630_v41 = vmax.f32 %v510_v34, 0.0  ;;  %v574_v51 = vadd.f32 %v1428_v48, %v1731_v32  ;;  %v565_v52 = vpop.f32.mrb[1].mxu1 }
  0xe9   : > { %v505_v40 = vadd.f32 %v1731_v32, %v504_v39  ;;  %v628_v43 = vmax.f32 %v502_v36, 0.0  ;;  %v566_v55 = vadd.f32 %v1731_v32, %v565_v52  ;;  %v1429_v56 = vpop.f32.mrb[2].mxu1 }
  0xea   : > { %v631_v42 = vmax.f32 %v513_v38, 0.0  ;;  %v646_v59 = vmax.f32 %v574_v51, 0.0  ;;  %v577_v60 = vadd.f32 %v1429_v56, %v1731_v32  ;;  %v568_v61 = vpop.f32.mrb[3].mxu1 }
  0xeb   : > { %v629_v44 = vmax.f32 %v505_v40, 0.0  ;;  %v644_v63 = vmax.f32 %v566_v55, 0.0  ;;  %v569_v0 = vadd.f32 %v1731_v32, %v568_v61 }
  0xec   : > { %v661_v45 = vpack.c.bf16 %v631_v42, %v630_v41  ;;  %v647_v3 = vmax.f32 %v577_v60, 0.0 }
  0xed   : > { %v660_v46 = vpack.c.bf16 %v629_v44, %v628_v43  ;;  %v1416_v47 = vpop.f32.mrb[4].mxu0  ;;  %v645_v6 = vmax.f32 %v569_v0, 0.0 }
  0xee   : > { %v526_v49 = vadd.f32 %v1416_v47, %v1731_v32  ;;  %v517_v50 = vpop.f32.mrb[5].mxu0  ;;  %v1745_v8 = vpack.c.bf16 %v647_v3, %v646_v59 }
  0xef   : > { %v518_v53 = vadd.f32 %v1731_v32, %v517_v50  ;;  %v1417_v54 = vpop.f32.mrb[6].mxu0  ;;  %1458 = vmatprep.mubr.bf16.mxu1 %v660_v46  ;;  %v1747_v11 = vpack.c.bf16 %v645_v6, %v644_v63  ;;  %v1432_v12 = vpop.f32.mrb[4].mxu1 }
  0xf0   : > { %v529_v57 = vadd.f32 %v1417_v54, %v1731_v32  ;;  %v520_v58 = vpop.f32.mrb[7].mxu0  ;;  %1459 = vmatmul.mubr.bf16.vlgmr.msra.gmra.mrb[16].mxu1 %v661_v45  ;;  %v634_v1 = vmax.f32 %v526_v49, 0.0  ;;  %v590_v15 = vadd.f32 %v1432_v12, %v1731_v32  ;;  %v581_v16 = vpop.f32.mrb[5].mxu1 }
  0xf1   : > { %v521_v62 = vadd.f32 %v1731_v32, %v520_v58  ;;  %v632_v4 = vmax.f32 %v518_v53, 0.0  ;;  %v582_v19 = vadd.f32 %v1731_v32, %v581_v16  ;;  %v1433_v20 = vpop.f32.mrb[6].mxu1 }
  0xf2   : > { %v635_v2 = vmax.f32 %v529_v57, 0.0  ;;  %v650_v23 = vmax.f32 %v590_v15, 0.0  ;;  %v593_v24 = vadd.f32 %v1433_v20, %v1731_v32  ;;  %v584_v25 = vpop.f32.mrb[7].mxu1  ;;  %v1582_v20 = vld [vmem:[%s1897_s5 + $0x30] sm:$0xff]  }
  0xf3   : > { %v633_v5 = vmax.f32 %v521_v62, 0.0  ;;  %v648_v27 = vmax.f32 %v582_v19, 0.0  ;;  %v585_v28 = vadd.f32 %v1731_v32, %v584_v25  ;;  %1502 = vmatprep.subr.bf16.mxu0 %v1582_v20 }
  0xf4   : > { %v663_v7 = vpack.c.bf16 %v635_v2, %v634_v1  ;;  %v651_v31 = vmax.f32 %v593_v24, 0.0  ;;  %1503 = vmatpush3.bf16.msra.mxu0 %v1582_v20 }
  0xf5   : > { %v662_v9 = vpack.c.bf16 %v633_v5, %v632_v4  ;;  %v1420_v10 = vpop.f32.mrb[8].mxu0  ;;  %v649_v35 = vmax.f32 %v585_v28, 0.0 }
  0xf6   : > { %v542_v13 = vadd.f32 %v1420_v10, %v1731_v32  ;;  %v533_v14 = vpop.f32.mrb[9].mxu0  ;;  %v671_v37 = vpack.c.bf16 %v651_v31, %v650_v23 }
  0xf7   : > { %v534_v17 = vadd.f32 %v1731_v32, %v533_v14  ;;  %v1421_v18 = vpop.f32.mrb[10].mxu0  ;;  %1462 = vmatprep.mubr.bf16.mxu1 %v662_v9  ;;  %v670_v40 = vpack.c.bf16 %v649_v35, %v648_v27  ;;  %v1436_v41 = vpop.f32.mrb[8].mxu1 }
  0xf8   : > { %v545_v21 = vadd.f32 %v1421_v18, %v1731_v32  ;;  %v536_v22 = vpop.f32.mrb[11].mxu0  ;;  %1463 = vmatmul.mubr.bf16.gmra.mrb[20].mxu1 %v663_v7  ;;  %v638_v29 = vmax.f32 %v542_v13, 0.0  ;;  %v606_v44 = vadd.f32 %v1436_v41, %v1731_v32  ;;  %v597_v45 = vpop.f32.mrb[9].mxu1 }
  0xf9   : > { %v537_v26 = vadd.f32 %v1731_v32, %v536_v22  ;;  %v636_v33 = vmax.f32 %v534_v17, 0.0  ;;  %v598_v48 = vadd.f32 %v1731_v32, %v597_v45  ;;  %v1437_v49 = vpop.f32.mrb[10].mxu1 }
  0xfa   : > { %v639_v30 = vmax.f32 %v545_v21, 0.0  ;;  %v654_v52 = vmax.f32 %v606_v44, 0.0  ;;  %v609_v53 = vadd.f32 %v1437_v49, %v1731_v32  ;;  %v600_v54 = vpop.f32.mrb[11].mxu1 }
  0xfb   : > { %v637_v34 = vmax.f32 %v537_v26, 0.0  ;;  %v652_v56 = vmax.f32 %v598_v48, 0.0  ;;  %v601_v57 = vadd.f32 %v1731_v32, %v600_v54 }
  0xfc   : > { %v665_v36 = vpack.c.bf16 %v639_v30, %v638_v29  ;;  %v655_v60 = vmax.f32 %v609_v53, 0.0 }
  0xfd   : > { %v664_v38 = vpack.c.bf16 %v637_v34, %v636_v33  ;;  %v1424_v39 = vpop.f32.mrb[12].mxu0  ;;  %v653_v63 = vmax.f32 %v601_v57, 0.0 }
  0xfe   : > { %v558_v42 = vadd.f32 %v1424_v39, %v1731_v32  ;;  %v549_v43 = vpop.f32.mrb[13].mxu0  ;;  %v673_v1 = vpack.c.bf16 %v655_v60, %v654_v52 }
  0xff   : > { %v550_v46 = vadd.f32 %v1731_v32, %v549_v43  ;;  %v1425_v47 = vpop.f32.mrb[14].mxu0  ;;  %1466 = vmatprep.mubr.bf16.mxu1 %v664_v38  ;;  %v672_v3 = vpack.c.bf16 %v653_v63, %v652_v56  ;;  %v1440_v4 = vpop.f32.mrb[12].mxu1 }
 0x100   : > { %v561_v50 = vadd.f32 %v1425_v47, %v1731_v32  ;;  %v552_v51 = vpop.f32.mrb[15].mxu0  ;;  %1467 = vmatmul.mubr.bf16.gmra.mrb[24].mxu1 %v665_v36  ;;  %v642_v58 = vmax.f32 %v558_v42, 0.0  ;;  %v622_v5 = vadd.f32 %v1440_v4, %v1731_v32  ;;  %v613_v6 = vpop.f32.mrb[13].mxu1 }
 0x101   : > { %v553_v55 = vadd.f32 %v1731_v32, %v552_v51  ;;  %v640_v61 = vmax.f32 %v550_v46, 0.0  ;;  %v614_v7 = vadd.f32 %v1731_v32, %v613_v6  ;;  %v1441_v9 = vpop.f32.mrb[14].mxu1 }
 0x102   : > { %v643_v59 = vmax.f32 %v561_v50, 0.0  ;;  %v658_v10 = vmax.f32 %v622_v5, 0.0  ;;  %v625_v12 = vadd.f32 %v1441_v9, %v1731_v32  ;;  %v616_v13 = vpop.f32.mrb[15].mxu1 }
 0x103   : > { %v641_v62 = vmax.f32 %v553_v55, 0.0  ;;  %v656_v14 = vmax.f32 %v614_v7, 0.0  ;;  %v617_v15 = vadd.f32 %v1731_v32, %v616_v13  ;;  %v1583_v32 = vld [vmem:[%s1897_s5 + $0x38] sm:$0xff]  }
 0x104   : > { %v667_v0 = vpack.c.bf16 %v643_v59, %v642_v58  ;;  %v659_v16 = vmax.f32 %v625_v12, 0.0  ;;  %1504 = vmatprep.subr.bf16.mxu0 %v1583_v32 }
 0x105   : > { %v666_v2 = vpack.c.bf16 %v641_v62, %v640_v61  ;;  %v657_v17 = vmax.f32 %v617_v15, 0.0  ;;  %1505 = vmatpush3.bf16.msra.mxu0 %v1583_v32 }
 0x106   : > { %v675_v18 = vpack.c.bf16 %v659_v16, %v658_v10 }
 0x107   : > { %1470 = vmatprep.mubr.bf16.mxu1 %v666_v2  ;;  %v674_v19 = vpack.c.bf16 %v657_v17, %v656_v14 }
 0x108   : > { %1471 = vmatmul.mubr.bf16.gmra.mrb[28].mxu1 %v667_v0 }
 0x109   : > { %1474 = vmatprep.mubr.bf16.mxu1 %v1747_v11 }
 0x110   : > { %1475 = vmatmul.mubr.bf16.gmra.mrb[32].mxu1 %v1745_v8  ;;  %v1780_v8 = vld [vmem:[%s1896_s4] ss:$0 sm:$0xff] }
 0x111   : > { %1478 = vmatprep.mubr.bf16.mxu1 %v670_v40 }
 0x118   : > { %1479 = vmatmul.mubr.bf16.gmra.mrb[36].mxu1 %v671_v37 }
 0x119   : > { %1482 = vmatprep.mubr.bf16.mxu1 %v672_v3 }
 0x120   : > { %1483 = vmatmul.mubr.bf16.gmra.mrb[40].mxu1 %v673_v1 }
 0x121   : > { %1486 = vmatprep.mubr.bf16.mxu1 %v674_v19 }
 0x128   : > { %1487 = vmatmul.mubr.bf16.gmra.mrb[44].mxu1 %v675_v18 }
 0x1c3   : > { %v1460_v11 = vpop.f32.mrb[16].mxu1 }
 0x1c4   : > { %v790_v21 = vadd.f32 %v1460_v11, %v1780_v8  ;;  %v781_v22 = vpop.f32.mrb[17].mxu1 }
 0x1c5   : > { %v782_v23 = vadd.f32 %v1780_v8, %v781_v22  ;;  %v1461_v24 = vpop.f32.mrb[18].mxu1 }
 0x1c6   : > { %v793_v25 = vadd.f32 %v1461_v24, %v1780_v8  ;;  %v784_v26 = vpop.f32.mrb[19].mxu1  ;;  %v910_v28 = vmax.f32 %v790_v21, 0.0 }
 0x1c7   : > { %v785_v27 = vadd.f32 %v1780_v8, %v784_v26  ;;  %v908_v30 = vmax.f32 %v782_v23, 0.0 }
 0x1c8   : > { %v911_v29 = vmax.f32 %v793_v25, 0.0 }
 0x1c9   : > { %v909_v31 = vmax.f32 %v785_v27, 0.0 }
 0x1ca   : > { %v941_v33 = vpack.c.bf16 %v911_v29, %v910_v28 }
 0x1cb   : > { %v940_v34 = vpack.c.bf16 %v909_v31, %v908_v30  ;;  %v1464_v35 = vpop.f32.mrb[20].mxu1 }
 0x1cc   : > { %v806_v36 = vadd.f32 %v1464_v35, %v1780_v8  ;;  %v797_v37 = vpop.f32.mrb[21].mxu1 }
 0x1cd   : > { %v798_v38 = vadd.f32 %v1780_v8, %v797_v37  ;;  %v1465_v39 = vpop.f32.mrb[22].mxu1  ;;  %1506 = vmatprep.mubr.bf16.mxu0 %v940_v34 }
 0x1ce   : > { %v809_v40 = vadd.f32 %v1465_v39, %v1780_v8  ;;  %v800_v41 = vpop.f32.mrb[23].mxu1  ;;  %1507 = vmatmul.mubr.bf16.vlgmr.msra.gmra.mrb[16].mxu0 %v941_v33  ;;  %v914_v43 = vmax.f32 %v806_v36, 0.0 }
 0x1cf   : > { %v801_v42 = vadd.f32 %v1780_v8, %v800_v41  ;;  %v912_v45 = vmax.f32 %v798_v38, 0.0 }
 0x1d0   : > { %v915_v44 = vmax.f32 %v809_v40, 0.0 }
 0x1d1   : > { %v913_v46 = vmax.f32 %v801_v42, 0.0 }
 0x1d2   : > { %v943_v47 = vpack.c.bf16 %v915_v44, %v914_v43 }
 0x1d3   : > { %v942_v48 = vpack.c.bf16 %v913_v46, %v912_v45  ;;  %v1468_v49 = vpop.f32.mrb[24].mxu1 }
 0x1d4   : > { %v822_v50 = vadd.f32 %v1468_v49, %v1780_v8  ;;  %v813_v51 = vpop.f32.mrb[25].mxu1 }
 0x1d5   : > { %v814_v52 = vadd.f32 %v1780_v8, %v813_v51  ;;  %v1469_v53 = vpop.f32.mrb[26].mxu1  ;;  %1510 = vmatprep.mubr.bf16.mxu0 %v942_v48 }
 0x1d6   : > { %v825_v54 = vadd.f32 %v1469_v53, %v1780_v8  ;;  %v816_v55 = vpop.f32.mrb[27].mxu1  ;;  %1511 = vmatmul.mubr.bf16.gmra.mrb[20].mxu0 %v943_v47  ;;  %v918_v57 = vmax.f32 %v822_v50, 0.0 }
 0x1d7   : > { %v817_v56 = vadd.f32 %v1780_v8, %v816_v55  ;;  %v916_v59 = vmax.f32 %v814_v52, 0.0 }
 0x1d8   : > { %v919_v58 = vmax.f32 %v825_v54, 0.0 }
 0x1d9   : > { %v917_v60 = vmax.f32 %v817_v56, 0.0 }
 0x1da   : > { %v945_v61 = vpack.c.bf16 %v919_v58, %v918_v57 }
 0x1db   : > { %v944_v62 = vpack.c.bf16 %v917_v60, %v916_v59  ;;  %v1472_v63 = vpop.f32.mrb[28].mxu1 }
 0x1dc   : > { %v838_v0 = vadd.f32 %v1472_v63, %v1780_v8  ;;  %v829_v1 = vpop.f32.mrb[29].mxu1 }
 0x1dd   : > { %v830_v2 = vadd.f32 %v1780_v8, %v829_v1  ;;  %v1473_v3 = vpop.f32.mrb[30].mxu1  ;;  %1514 = vmatprep.mubr.bf16.mxu0 %v944_v62 }
 0x1de   : > { %v841_v4 = vadd.f32 %v1473_v3, %v1780_v8  ;;  %v832_v5 = vpop.f32.mrb[31].mxu1  ;;  %1515 = vmatmul.mubr.bf16.gmra.mrb[24].mxu0 %v945_v61  ;;  %v922_v7 = vmax.f32 %v838_v0, 0.0 }
 0x1df   : > { %v833_v6 = vadd.f32 %v1780_v8, %v832_v5  ;;  %v920_v10 = vmax.f32 %v830_v2, 0.0 }
 0x1e0   : > { %v923_v9 = vmax.f32 %v841_v4, 0.0 }
 0x1e1   : > { %v921_v12 = vmax.f32 %v833_v6, 0.0  ;;  %v1818_v6 = vld [vmem:[%s1898_s6] ss:$0 sm:$0xff] }
 0x1e2   : > { %v947_v13 = vpack.c.bf16 %v923_v9, %v922_v7 }
 0x1e3   : > { %v946_v14 = vpack.c.bf16 %v921_v12, %v920_v10  ;;  %v1476_v15 = vpop.f32.mrb[32].mxu1 }
 0x1e4   : > { %v854_v16 = vadd.f32 %v1476_v15, %v1780_v8  ;;  %v845_v17 = vpop.f32.mrb[33].mxu1 }
 0x1e5   : > { %v846_v18 = vadd.f32 %v1780_v8, %v845_v17  ;;  %v1477_v19 = vpop.f32.mrb[34].mxu1  ;;  %1518 = vmatprep.mubr.bf16.mxu0 %v946_v14 }
 0x1e6   : > { %v857_v20 = vadd.f32 %v1477_v19, %v1780_v8  ;;  %v848_v32 = vpop.f32.mrb[35].mxu1  ;;  %1519 = vmatmul.mubr.bf16.gmra.mrb[28].mxu0 %v947_v13  ;;  %v926_v21 = vmax.f32 %v854_v16, 0.0 }
 0x1e7   : > { %v849_v11 = vadd.f32 %v1780_v8, %v848_v32  ;;  %v924_v23 = vmax.f32 %v846_v18, 0.0 }
 0x1e8   : > { %v927_v22 = vmax.f32 %v857_v20, 0.0 }
 0x1e9   : > { %v925_v24 = vmax.f32 %v849_v11, 0.0 }
 0x1ea   : > { %v949_v25 = vpack.c.bf16 %v927_v22, %v926_v21 }
 0x1eb   : > { %v948_v26 = vpack.c.bf16 %v925_v24, %v924_v23  ;;  %v1480_v27 = vpop.f32.mrb[36].mxu1 }
 0x1ec   : > { %v870_v28 = vadd.f32 %v1480_v27, %v1780_v8  ;;  %v861_v29 = vpop.f32.mrb[37].mxu1 }
 0x1ed   : > { %v862_v30 = vadd.f32 %v1780_v8, %v861_v29  ;;  %v1481_v31 = vpop.f32.mrb[38].mxu1  ;;  %1522 = vmatprep.mubr.bf16.mxu0 %v948_v26 }
 0x1ee   : > { %v873_v33 = vadd.f32 %v1481_v31, %v1780_v8  ;;  %v864_v34 = vpop.f32.mrb[39].mxu1  ;;  %1523 = vmatmul.mubr.bf16.gmra.mrb[32].mxu0 %v949_v25  ;;  %v930_v36 = vmax.f32 %v870_v28, 0.0 }
 0x1ef   : > { %v865_v35 = vadd.f32 %v1780_v8, %v864_v34  ;;  %v928_v38 = vmax.f32 %v862_v30, 0.0 }
 0x1f0   : > { %v931_v37 = vmax.f32 %v873_v33, 0.0 }
 0x1f1   : > { %v929_v39 = vmax.f32 %v865_v35, 0.0 }
 0x1f2   : > { %v951_v40 = vpack.c.bf16 %v931_v37, %v930_v36 }
 0x1f3   : > { %v950_v41 = vpack.c.bf16 %v929_v39, %v928_v38  ;;  %v1484_v42 = vpop.f32.mrb[40].mxu1 }
 0x1f4   : > { %v886_v43 = vadd.f32 %v1484_v42, %v1780_v8  ;;  %v877_v44 = vpop.f32.mrb[41].mxu1 }
 0x1f5   : > { %v878_v45 = vadd.f32 %v1780_v8, %v877_v44  ;;  %v1485_v46 = vpop.f32.mrb[42].mxu1  ;;  %1526 = vmatprep.mubr.bf16.mxu0 %v950_v41 }
 0x1f6   : > { %v889_v47 = vadd.f32 %v1485_v46, %v1780_v8  ;;  %v880_v48 = vpop.f32.mrb[43].mxu1  ;;  %1527 = vmatmul.mubr.bf16.gmra.mrb[36].mxu0 %v951_v40  ;;  %v934_v50 = vmax.f32 %v886_v43, 0.0 }
 0x1f7   : > { %v881_v49 = vadd.f32 %v1780_v8, %v880_v48  ;;  %v932_v52 = vmax.f32 %v878_v45, 0.0 }
 0x1f8   : > { %v935_v51 = vmax.f32 %v889_v47, 0.0 }
 0x1f9   : > { %v933_v53 = vmax.f32 %v881_v49, 0.0 }
 0x1fa   : > { %v953_v54 = vpack.c.bf16 %v935_v51, %v934_v50 }
 0x1fb   : > { %v952_v55 = vpack.c.bf16 %v933_v53, %v932_v52  ;;  %v1488_v56 = vpop.f32.mrb[44].mxu1 }
 0x1fc   : > { %v902_v57 = vadd.f32 %v1488_v56, %v1780_v8  ;;  %v893_v58 = vpop.f32.mrb[45].mxu1 }
 0x1fd   : > { %v894_v59 = vadd.f32 %v1780_v8, %v893_v58  ;;  %v1489_v60 = vpop.f32.mrb[46].mxu1  ;;  %1530 = vmatprep.mubr.bf16.mxu0 %v952_v55 }
 0x1fe   : > { %v905_v61 = vadd.f32 %v1489_v60, %v1780_v8  ;;  %v896_v62 = vpop.f32.mrb[47].mxu1  ;;  %1531 = vmatmul.mubr.bf16.gmra.mrb[40].mxu0 %v953_v54  ;;  %v938_v0 = vmax.f32 %v902_v57, 0.0 }
 0x1ff   : > { %v897_v63 = vadd.f32 %v1780_v8, %v896_v62  ;;  %v936_v2 = vmax.f32 %v894_v59, 0.0 }
 0x200   : > { %v939_v1 = vmax.f32 %v905_v61, 0.0 }
 0x201   : > { %v937_v3 = vmax.f32 %v897_v63, 0.0 }
 0x202   : > { %v955_v4 = vpack.c.bf16 %v939_v1, %v938_v0 }
 0x203   : > { %v954_v5 = vpack.c.bf16 %v937_v3, %v936_v2 }
 0x205   : > { %1534 = vmatprep.mubr.bf16.mxu0 %v954_v5 }
 0x206   : > { %1535 = vmatmul.mubr.bf16.gmra.mrb[44].mxu0 %v955_v4 }
 0x2a1   : > { %v1508_v8 = vpop.f32.mrb[16].mxu0 }
 0x2a2   : > { %v1070_v7 = vadd.f32 %v1508_v8, %v1818_v6  ;;  %v1061_v9 = vpop.f32.mrb[17].mxu0 }
 0x2a3   : > { %v1062_v10 = vadd.f32 %v1818_v6, %v1061_v9  ;;  %v1509_v12 = vpop.f32.mrb[18].mxu0 }
 0x2a4   : > { %1190 = vst [vmem:[%s1823_s11 + $0x10] sm:$0xff] %v1070_v7  ;;  %v1073_v13 = vadd.f32 %v1509_v12, %v1818_v6  ;;  %v1064_v14 = vpop.f32.mrb[19].mxu0 }
 0x2a5   : > { %1188 = vst [vmem:[%s1823_s11] sm:$0xff] %v1062_v10  ;;  %v1065_v15 = vadd.f32 %v1818_v6, %v1064_v14 }
 0x2a6   : > { %1191 = vst [vmem:[%s1823_s11 + $0x18] sm:$0xff] %v1073_v13 }
 0x2a7   : > { %1189 = vst [vmem:[%s1823_s11 + $0x8] sm:$0xff] %v1065_v15 }
 0x2a9   : > { %v1512_v16 = vpop.f32.mrb[20].mxu0 }
 0x2aa   : > { %v1086_v17 = vadd.f32 %v1512_v16, %v1818_v6  ;;  %v1077_v18 = vpop.f32.mrb[21].mxu0 }
 0x2ab   : > { %v1078_v19 = vadd.f32 %v1818_v6, %v1077_v18  ;;  %v1513_v20 = vpop.f32.mrb[22].mxu0 }
 0x2ac   : > { %1194 = vst [vmem:[%s1823_s11 + $0x30] sm:$0xff] %v1086_v17  ;;  %v1089_v32 = vadd.f32 %v1513_v20, %v1818_v6  ;;  %v1080_v11 = vpop.f32.mrb[23].mxu0 }
 0x2ad   : > { %1192 = vst [vmem:[%s1823_s11 + $0x20] sm:$0xff] %v1078_v19  ;;  %v1081_v21 = vadd.f32 %v1818_v6, %v1080_v11 }
 0x2ae   : > { %1195 = vst [vmem:[%s1823_s11 + $0x38] sm:$0xff] %v1089_v32 }
 0x2af   : > { %1193 = vst [vmem:[%s1823_s11 + $0x28] sm:$0xff] %v1081_v21 }
 0x2b1   : > { %v1516_v22 = vpop.f32.mrb[24].mxu0 }
 0x2b2   : > { %v1102_v23 = vadd.f32 %v1516_v22, %v1818_v6  ;;  %v1093_v24 = vpop.f32.mrb[25].mxu0 }
 0x2b3   : > { %v1094_v25 = vadd.f32 %v1818_v6, %v1093_v24  ;;  %v1517_v26 = vpop.f32.mrb[26].mxu0 }
 0x2b4   : > { %1198 = vst [vmem:[%s1823_s11 + $0x50] sm:$0xff] %v1102_v23  ;;  %v1105_v27 = vadd.f32 %v1517_v26, %v1818_v6  ;;  %v1096_v28 = vpop.f32.mrb[27].mxu0 }
 0x2b5   : > { %1196 = vst [vmem:[%s1823_s11 + $0x40] sm:$0xff] %v1094_v25  ;;  %v1097_v29 = vadd.f32 %v1818_v6, %v1096_v28 }
 0x2b6   : > { %1199 = vst [vmem:[%s1823_s11 + $0x58] sm:$0xff] %v1105_v27 }
 0x2b7   : > { %1197 = vst [vmem:[%s1823_s11 + $0x48] sm:$0xff] %v1097_v29 }
 0x2b9   : > { %v1520_v30 = vpop.f32.mrb[28].mxu0 }
 0x2ba   : > { %v1118_v31 = vadd.f32 %v1520_v30, %v1818_v6  ;;  %v1109_v33 = vpop.f32.mrb[29].mxu0 }
 0x2bb   : > { %v1110_v34 = vadd.f32 %v1818_v6, %v1109_v33  ;;  %v1521_v35 = vpop.f32.mrb[30].mxu0 }
 0x2bc   : > { %1202 = vst [vmem:[%s1823_s11 + $0x70] sm:$0xff] %v1118_v31  ;;  %v1121_v36 = vadd.f32 %v1521_v35, %v1818_v6  ;;  %v1112_v37 = vpop.f32.mrb[31].mxu0 }
 0x2bd   : > { %1200 = vst [vmem:[%s1823_s11 + $0x60] sm:$0xff] %v1110_v34  ;;  %v1113_v38 = vadd.f32 %v1818_v6, %v1112_v37 }
 0x2be   : > { %1203 = vst [vmem:[%s1823_s11 + $0x78] sm:$0xff] %v1121_v36 }
 0x2bf   : > { %1201 = vst [vmem:[%s1823_s11 + $0x68] sm:$0xff] %v1113_v38 }
 0x2c1   : > { %v1524_v39 = vpop.f32.mrb[32].mxu0 }
 0x2c2   : > { %v1134_v40 = vadd.f32 %v1524_v39, %v1818_v6  ;;  %v1125_v41 = vpop.f32.mrb[33].mxu0 }
 0x2c3   : > { %v1126_v42 = vadd.f32 %v1818_v6, %v1125_v41  ;;  %v1525_v43 = vpop.f32.mrb[34].mxu0 }
 0x2c4   : > { %1206 = vst [vmem:[%s1823_s11 + $0x90] sm:$0xff] %v1134_v40  ;;  %v1137_v44 = vadd.f32 %v1525_v43, %v1818_v6  ;;  %v1128_v45 = vpop.f32.mrb[35].mxu0 }
 0x2c5   : > { %1204 = vst [vmem:[%s1823_s11 + $0x80] sm:$0xff] %v1126_v42  ;;  %v1129_v46 = vadd.f32 %v1818_v6, %v1128_v45 }
 0x2c6   : > { %1207 = vst [vmem:[%s1823_s11 + $0x98] sm:$0xff] %v1137_v44 }
 0x2c7   : > { %1205 = vst [vmem:[%s1823_s11 + $0x88] sm:$0xff] %v1129_v46 }
 0x2c9   : > { %v1528_v47 = vpop.f32.mrb[36].mxu0 }
 0x2ca   : > { %v1150_v48 = vadd.f32 %v1528_v47, %v1818_v6  ;;  %v1141_v49 = vpop.f32.mrb[37].mxu0 }
 0x2cb   : > { %v1142_v50 = vadd.f32 %v1818_v6, %v1141_v49  ;;  %v1529_v51 = vpop.f32.mrb[38].mxu0 }
 0x2cc   : > { %1210 = vst [vmem:[%s1823_s11 + $0xb0] sm:$0xff] %v1150_v48  ;;  %v1153_v52 = vadd.f32 %v1529_v51, %v1818_v6  ;;  %v1144_v53 = vpop.f32.mrb[39].mxu0 }
 0x2cd   : > { %1208 = vst [vmem:[%s1823_s11 + $0xa0] sm:$0xff] %v1142_v50  ;;  %v1145_v54 = vadd.f32 %v1818_v6, %v1144_v53 }
 0x2ce   : > { %1211 = vst [vmem:[%s1823_s11 + $0xb8] sm:$0xff] %v1153_v52 }
 0x2cf   : > { %1209 = vst [vmem:[%s1823_s11 + $0xa8] sm:$0xff] %v1145_v54 }
 0x2d1   : > { %v1532_v55 = vpop.f32.mrb[40].mxu0 }
 0x2d2   : > { %v1166_v56 = vadd.f32 %v1532_v55, %v1818_v6  ;;  %v1157_v57 = vpop.f32.mrb[41].mxu0 }
 0x2d3   : > { %v1158_v58 = vadd.f32 %v1818_v6, %v1157_v57  ;;  %v1533_v59 = vpop.f32.mrb[42].mxu0 }
 0x2d4   : > { %1214 = vst [vmem:[%s1823_s11 + $0xd0] sm:$0xff] %v1166_v56  ;;  %v1169_v60 = vadd.f32 %v1533_v59, %v1818_v6  ;;  %v1160_v61 = vpop.f32.mrb[43].mxu0 }
 0x2d5   : > { %1212 = vst [vmem:[%s1823_s11 + $0xc0] sm:$0xff] %v1158_v58  ;;  %v1161_v62 = vadd.f32 %v1818_v6, %v1160_v61 }
 0x2d6   : > { %1215 = vst [vmem:[%s1823_s11 + $0xd8] sm:$0xff] %v1169_v60 }
 0x2d7   : > { %1213 = vst [vmem:[%s1823_s11 + $0xc8] sm:$0xff] %v1161_v62 }
 0x2d9   : > { %v1536_v63 = vpop.f32.mrb[44].mxu0 }
 0x2da   : > { %v1182_v0 = vadd.f32 %v1536_v63, %v1818_v6  ;;  %v1173_v1 = vpop.f32.mrb[45].mxu0 }
 0x2db   : > { %v1174_v2 = vadd.f32 %v1818_v6, %v1173_v1  ;;  %v1537_v3 = vpop.f32.mrb[46].mxu0 }
 0x2dc   : > { %1218 = vst [vmem:[%s1823_s11 + $0xf0] sm:$0xff] %v1182_v0  ;;  %v1185_v4 = vadd.f32 %v1537_v3, %v1818_v6  ;;  %v1176_v5 = vpop.f32.mrb[47].mxu0 }
 0x2dd   : > { %1216 = vst [vmem:[%s1823_s11 + $0xe0] sm:$0xff] %v1174_v2  ;;  %v1177_v8 = vadd.f32 %v1818_v6, %v1176_v5 }
 0x2de   : > { %1219 = vst [vmem:[%s1823_s11 + $0xf8] sm:$0xff] %v1185_v4 }
 0x2df   : > { %1217 = vst [vmem:[%s1823_s11 + $0xe8] sm:$0xff] %v1177_v8 }
 0x2e0 PF: > { %s17_s24 = sadd.s32 1, %s1590_s24  }
 0x2e1   : > { %p14_p4 = scmp.ge.s32.totalorder %s17_s24, 4  }
 0x2e3   :  { %16 = sbr.rel (!%p14_p4) target bundleno = 1 (0x1), region = 78 }

</bundles_post_ra>
